<compile_context>
chip_gen: v5e
topology: v5e:2x2
jax: 0.10.0
libtpu: 0.0.40
codegen_flags: <defaults>
</compile_context>

<pallas_src>
import functools

import jax
import jax.numpy as jnp
from jax.experimental import pallas as pl
from jax.experimental.pallas import tpu as pltpu


def _label_smoothing_kernel(x_ref, tgt_ref, loss_ref, td_ref, *,
                            size, padding_idx, smoothing):
    """Single invocation over the whole (N, size) problem.

    x_ref:   (N, V) f32 log-probs     (VMEM)
    tgt_ref: (N, 1) i32 targets       (VMEM)
    loss_ref:(1, 1) f32 scalar loss   (SMEM)
    td_ref:  (N, V) f32 true_dist     (VMEM)  -- mirrors self.true_dist
    """
    x = x_ref[...]            # (N, V)
    tgt = tgt_ref[...]        # (N, 1)

    base = jnp.float32(smoothing / (size - 2))
    conf = jnp.float32(1.0 - smoothing)

    # Column-index grid (>=2D iota is required on TPU).
    col = jax.lax.broadcasted_iota(jnp.int32, x.shape, 1)

    # true_dist.fill_(base); scatter_(1, target, confidence);
    # true_dist[:, padding_idx] = 0; zero rows whose target is the pad id.
    td = jnp.where(col == tgt, conf, base)
    td = jnp.where(col == padding_idx, jnp.float32(0.0), td)
    td = jnp.where(tgt == padding_idx, jnp.float32(0.0), td)

    td_ref[...] = td

    # KLDivLoss(reduction='sum'):  sum  y * (log y - x),  0 where y == 0.
    pos = td > 0.0
    safe = jnp.where(pos, td, jnp.float32(1.0))
    contrib = jnp.where(pos, td * (jnp.log(safe) - x), jnp.float32(0.0))
    loss_ref[0, 0] = jnp.sum(contrib)


def label_smoothing(x, target, *, size, padding_idx, smoothing):
    """x: (N, size) f32 log-probs, target: (N,) int32.
    Returns (scalar loss, true_dist) -- loss is the module's return value,
    true_dist mirrors the stored self.true_dist attribute."""
    N, V = x.shape
    assert V == size, "x.shape[1] must equal size (module asserts this)"

    tgt2d = target.reshape(N, 1).astype(jnp.int32)

    kernel = functools.partial(_label_smoothing_kernel, size=size,
                               padding_idx=padding_idx, smoothing=smoothing)

    # Tiny problem: no grid, whole arrays resident in VMEM, scalar out in SMEM.
    # TODO(synk): for large N, tile rows with a grid over N ("arbitrary" axis)
    # and accumulate the loss across steps with pl.when init/finalize.
    loss, true_dist = pl.pallas_call(
        kernel,
        out_shape=(jax.ShapeDtypeStruct((1, 1), jnp.float32),
                   jax.ShapeDtypeStruct((N, V), jnp.float32)),
        in_specs=[
            pl.BlockSpec(memory_space=pltpu.MemorySpace.VMEM),   # x
            pl.BlockSpec(memory_space=pltpu.MemorySpace.VMEM),   # target
        ],
        out_specs=(
            pl.BlockSpec(memory_space=pltpu.MemorySpace.SMEM),   # loss scalar
            pl.BlockSpec(memory_space=pltpu.MemorySpace.VMEM),   # true_dist
        ),
    )(x, tgt2d)
    return loss[0, 0], true_dist


def _reference(x, target, *, size, padding_idx, smoothing):
    """Pure-JAX mirror of the PyTorch forward (KLDivLoss reduction='sum')."""
    N, V = x.shape
    confidence = 1.0 - smoothing
    base = smoothing / (size - 2)
    td = jnp.full((N, V), base, jnp.float32)
    td = td.at[jnp.arange(N), target].set(confidence)
    td = td.at[:, padding_idx].set(0.0)
    td = jnp.where((target == padding_idx)[:, None], 0.0, td)
    pos = td > 0.0
    safe = jnp.where(pos, td, 1.0)
    loss = jnp.sum(jnp.where(pos, td * (jnp.log(safe) - x), 0.0))
    return loss, td


if __name__ == "__main__":
    # N = batch * seq = 2 * 8 rows, vocab size 32 (consistent with the
    # translation model's tiny-demo scale).
    N, V = 16, 32
    padding_idx = 0
    smoothing = 0.1

    root = jax.random.PRNGKey(0)
    kx, kt = jax.random.split(root)
    logits = jax.random.normal(kx, (N, V), jnp.float32)
    x = jax.nn.log_softmax(logits, axis=-1)          # KLDivLoss expects log-probs
    target = jax.random.randint(kt, (N,), 0, V, jnp.int32)
    # Force a couple of padding targets to exercise the row-zeroing path.
    target = target.at[3].set(padding_idx)
    target = target.at[7].set(padding_idx)

    loss, true_dist = label_smoothing(x, target, size=V,
                                      padding_idx=padding_idx,
                                      smoothing=smoothing)
    loss = jax.block_until_ready(loss)

    ref_loss, ref_td = _reference(x, target, size=V, padding_idx=padding_idx,
                                  smoothing=smoothing)
    assert true_dist.shape == (N, V)
    assert jnp.allclose(true_dist, ref_td, atol=1e-6, rtol=1e-6), "true_dist mismatch"
    assert jnp.allclose(loss, ref_loss, atol=1e-4, rtol=1e-4), "loss mismatch"

    print("KERNEL_OK")
</pallas_src>

<mosaic_0001>
module attributes {stable_mosaic.version = 11 : i64} {
  func.func @_label_smoothing_kernel(%arg0: memref<16x32xf32, #tpu.memory_space<vmem>>, %arg1: memref<16x1xi32, #tpu.memory_space<vmem>>, %arg2: memref<1x1xf32, #tpu.memory_space<smem>>, %arg3: memref<16x32xf32, #tpu.memory_space<vmem>>) attributes {dimension_semantics = [], scalar_prefetch = 0 : i64, scratch_operands = 0 : i64, tpu.core_type = #tpu.core_type<tc>} {
    %c0 = arith.constant 0 : index
    %c0_0 = arith.constant 0 : index
    %0 = vector.load %arg0[%c0, %c0_0] : memref<16x32xf32, #tpu.memory_space<vmem>>, vector<16x32xf32>
    %c0_1 = arith.constant 0 : index
    %c0_2 = arith.constant 0 : index
    %1 = vector.load %arg1[%c0_1, %c0_2] : memref<16x1xi32, #tpu.memory_space<vmem>>, vector<16x1xi32>
    %2 = tpu.iota {dimensions = array<i32: 1>} : vector<16x32xi32>
    %3 = vector.broadcast %1 : vector<16x1xi32> to vector<16x32xi32>
    %4 = arith.cmpi eq, %2, %3 : vector<16x32xi32>
    %cst = arith.constant 0.899999976 : f32
    %cst_3 = arith.constant 0.00333333341 : f32
    %5 = vector.broadcast %cst : f32 to vector<16x32xf32>
    %6 = vector.broadcast %cst_3 : f32 to vector<16x32xf32>
    %7 = arith.select %4, %5, %6 : vector<16x32xi1>, vector<16x32xf32>
    %c0_i32 = arith.constant 0 : i32
    %8 = vector.broadcast %c0_i32 : i32 to vector<16x32xi32>
    %9 = arith.cmpi eq, %2, %8 : vector<16x32xi32>
    %cst_4 = arith.constant 0.000000e+00 : f32
    %10 = vector.broadcast %cst_4 : f32 to vector<16x32xf32>
    %11 = arith.select %9, %10, %7 : vector<16x32xi1>, vector<16x32xf32>
    %c0_i32_5 = arith.constant 0 : i32
    %12 = vector.broadcast %c0_i32_5 : i32 to vector<16x1xi32>
    %13 = arith.cmpi eq, %1, %12 : vector<16x1xi32>
    %cst_6 = arith.constant 0.000000e+00 : f32
    %14 = vector.shape_cast %13 : vector<16x1xi1> to vector<16x1xi1>
    %15 = vector.broadcast %14 : vector<16x1xi1> to vector<16x32xi1>
    %16 = vector.broadcast %cst_6 : f32 to vector<16x32xf32>
    %17 = arith.select %15, %16, %11 : vector<16x32xi1>, vector<16x32xf32>
    %c0_7 = arith.constant 0 : index
    %c0_8 = arith.constant 0 : index
    %18 = vector.load %arg3[%c0_7, %c0_8] : memref<16x32xf32, #tpu.memory_space<vmem>>, vector<16x32xf32>
    tpu.vector_store %arg3[%c0_7, %c0_8], %17 {strides = array<i32>} : memref<16x32xf32, #tpu.memory_space<vmem>>, vector<16x32xf32>,
    %cst_9 = arith.constant 0.000000e+00 : f32
    %19 = vector.broadcast %cst_9 : f32 to vector<16x32xf32>
    %20 = arith.cmpf ogt, %17, %19 : vector<16x32xf32>
    %cst_10 = arith.constant 1.000000e+00 : f32
    %21 = vector.broadcast %cst_10 : f32 to vector<16x32xf32>
    %22 = arith.select %20, %17, %21 : vector<16x32xi1>, vector<16x32xf32>
    %23 = math.log %22 : vector<16x32xf32>
    %24 = arith.subf %23, %0 : vector<16x32xf32>
    %25 = arith.mulf %17, %24 : vector<16x32xf32>
    %cst_11 = arith.constant 0.000000e+00 : f32
    %26 = vector.broadcast %cst_11 : f32 to vector<16x32xf32>
    %27 = arith.select %20, %25, %26 : vector<16x32xi1>, vector<16x32xf32>
    %28 = vector.shape_cast %27 : vector<16x32xf32> to vector<1x16x32xf32>
    %cst_12 = arith.constant dense<0.000000e+00> : vector<1xf32>
    %29 = vector.multi_reduction <add>, %28, %cst_12 [1, 2] : vector<1x16x32xf32> to vector<1xf32>
    %30 = vector.shape_cast %29 : vector<1xf32> to vector<1x1x1xf32>
    %31 = vector.extract %30[0, 0, 0] : f32 from vector<1x1x1xf32>
    %c0_13 = arith.constant 0 : index
    %c0_14 = arith.constant 0 : index
    %32 = memref.load %arg2[%c0_13, %c0_14] : memref<1x1xf32, #tpu.memory_space<smem>>
    memref.store %31, %arg2[%c0_13, %c0_14] : memref<1x1xf32, #tpu.memory_space<smem>>
    return
  }
}

</mosaic_0001>

<bundles_post_ra>
// kernel: tpu_custom_call.1
= control target key start
LH: loop header
LB: loop body
LE: loop exit
PB: predicated region body
PF: predicated region fallthrough
CT: control target
= control target key end

     0   :  { %9 = vsyncpa [#allocation4], 0  ;;  %v166_v1 = vmov 0   ;;  %s218_s0 = inlined_call_operand.vmem [shape: f32[16,32], index: 0, kind: input, shape index: {}]   ;;  %s219_s1 = inlined_call_operand.vmem [shape: s32[16,1], index: 1, kind: input, shape index: {}]   ;;  %s220_s2 = inlined_call_operand.hbm [shape: f32[1,1], index: 2, kind: output, shape index: {0}]   ;;  %s221_s3 = inlined_call_operand.hbm [shape: f32[16,32], index: 3, kind: output, shape index: {1}]  }
   0x1   :  { %v17_v0 = vld [vmem:[%s219_s1] sm:$0xff]  ;;  %120 = vset.pattern.permute.xlu0 %v166_v1  ;;  %121 = vset.pattern.permute.xlu1 %v166_v1 }
   0x2   :  { %vm34_vm0 = vcmp.eq.s32.totalorder %v17_v0, 0 }
   0x3   :  { %10 = vsyncpa [#allocation3], 0  ;;  %22 = vperm.xlu0 %120, %v17_v0   ;;  %v36_v2 = vsel %vm34_vm0, 1, %v166_v1  ;;  %v18_v3 = vld [vmem:[%s219_s1 + $0x8] sm:$0xff]  ;;  %v19_v5 = vlaneseq  ;;  %v167_v9 = vmov 0.0033333334  }
   0x4   :  { %39 = vperm.xlu1 %121, %v36_v2   ;;  %vm35_vm1 = vcmp.eq.s32.totalorder %v18_v3, 0  ;;  %vm48_vm5 = vcmask 261120   ;;  %v15_v22 = vld [vmem:[%s218_s0] sm:$0xff]  ;;  %v16_v25 = vld [vmem:[%s218_s0 + $0x8] sm:$0xff]  ;;  %s168_s19 = smov [#allocation5]   ;;  %s94_s0 = sshll.u32 %s221_s3, 4  ;;  %s95_s0 = int_to_ptr.hbm [resolvable:$true] %s94_s0 }
   0x5   :  { %v37_v4 = vsel %vm35_vm1, 1, %v166_v1  ;;  %v20_v6 = vand.u32 127, %v19_v5  ;;  %s92_s20 = sshll.u32 %s168_s19, 4  ;;  %s169_s23 = smov 128   ;;  %s93_s20 = int_to_ptr.vmem [resolvable:$true] %s92_s20 }
   0x6   :  { %s170_s24 = smov 8   ;;  %s84_s27 = sshll.u32 %s220_s2, 4  ;;  %s85_s27 = int_to_ptr.hbm [resolvable:$true] %s84_s27 }
   0x7   :  { %vm31_vm2 = vcmp.eq.s32.totalorder %v20_v6, 0  ;;  %s171_s3 = smov [#allocation2]  }
   0xb   :  { %25 = vperm.xlu0 %120, %v18_v3  }
   0xc   :  { %42 = vperm.xlu1 %121, %v37_v4  }
  0x75   :  { %v23_v7 = vpop.permute.xlu0 %22 }
  0x76   :  { %vm27_vm3 = vcmp.eq.s32.totalorder %v20_v6, %v23_v7  ;;  %v40_v8 = vpop.permute.xlu1 %39 }
  0x77   :  { %v29_v10 = vsel %vm27_vm3, 0.9, %v167_v9  ;;  %vm44_vm4 = vcmp.eq.s32.totalorder %v40_v8, 1 }
  0x78   :  { %v32_v11 = vsel %vm31_vm2, 0.0, %v29_v10 }
  0x79   :  { %v46_v12 = vsel %vm44_vm4, 0.0, %v32_v11 }
  0x7a   :  { %49 = vst.msk [vmem:[#allocation5] sm:$0xff] %vm48_vm5, %v46_v12  ;;  %vm51_vm6 = vcmp.gt.f32.partialorder %v46_v12, 0.0 }
  0x7b   :  { %v53_v13 = vsel %vm51_vm6, %v46_v12, 1.0 }
  0x7c   :  { %122 = vlog2.f32 %v53_v13 }
  0x7d   :  { %v26_v14 = vpop.permute.xlu0 %25 }
  0x7e   :  { %vm28_vm7 = vcmp.eq.s32.totalorder %v20_v6, %v26_v14  ;;  %v43_v15 = vpop.permute.xlu1 %42 }
  0x7f   :  { %v30_v16 = vsel %vm28_vm7, 0.9, %v167_v9  ;;  %vm45_vm8 = vcmp.eq.s32.totalorder %v43_v15, 1 }
  0x80   :  { %v33_v17 = vsel %vm31_vm2, 0.0, %v30_v16 }
  0x81   :  { %v47_v18 = vsel %vm45_vm8, 0.0, %v33_v17 }
  0x82   :  { %v123_v19 = vpop.eup %122  ;;  %50 = vst.msk [vmem:[#allocation5 + $0x8] sm:$0xff] %vm48_vm5, %v47_v18  ;;  %vm52_vm9 = vcmp.gt.f32.partialorder %v47_v18, 0.0 }
  0x83   :  { %v54_v20 = vsel %vm52_vm9, %v47_v18, 1.0  ;;  %v56_v21 = vmul.f32 0.6931472, %v123_v19  ;;  %100 = dma.vmem_to_hbm [thread:$0]  %s93_s20, 256, %s95_s0, [#allocation3], %s169_s23, %s169_s23, %s170_s24  }
  0x84   :  { %124 = vlog2.f32 %v54_v20 }
  0x85   :  { %v59_v23 = vsub.f32 %v56_v21, %v15_v22 }
  0x87   :  { %v61_v27 = vmul.f32 %v59_v23, %v46_v12 }
  0x89   :  { %v63_v30 = vsel %vm51_vm6, %v61_v27, 0.0 }
  0x8a   :  { %v125_v24 = vpop.eup %124  ;;  %v65_v32 = vsel %vm48_vm5, %v63_v30, 0.0 }
  0x8b   :  { %v58_v26 = vmul.f32 0.6931472, %v125_v24 }
  0x8d   :  { %v60_v28 = vsub.f32 %v58_v26, %v16_v25 }
  0x8f   :  { %v62_v29 = vmul.f32 %v60_v28, %v47_v18 }
  0x91   :  { %v64_v31 = vsel %vm52_vm9, %v62_v29, 0.0 }
  0x92   :  { %v66_v33 = vsel %vm48_vm5, %v64_v31, 0.0 }
  0x93   :  { %v67_v34 = vadd.f32 %v66_v33, %v65_v32 }
  0x95   :  { %68 = vadd.xlane.f32.xlu2 %v67_v34 }
 0x108   :  { %v69_v35 = vpop.xlane.xlu2 %68 }
 0x109   :  { %v70_v36 = vrot.slane %v69_v35, 4 }
 0x10b   :  { %v71_v37 = vadd.f32 %v70_v36, %v69_v35 }
 0x10d   :  { %v72_v38 = vrot.slane %v71_v37, 2 }
 0x10f   :  { %v73_v39 = vadd.f32 %v72_v38, %v71_v37 }
 0x111   :  { %v74_v40 = vrot.slane %v73_v39, 1 }
 0x113   :  { %v75_v41 = vadd.f32 %v74_v40, %v73_v39 }
 0x115   :  { %112 = vpush %v75_v41 }
 0x146   :  { %s113_s28 = spop %112 }
 0x147   :  { %78 = sst [smem:[#allocation2]] %s113_s28 }
 0x148   :  { %87 = dma.smem_to_hbm %s171_s3, 16, %s85_s27, [#allocation4]  }
 0x149   :  { %162 = dma.done.wait [#allocation4], 16  }
 0x14a   :  { %163 = vsyncadd [#allocation4], 4294967280 }
 0x14b   :  { %164 = dma.done.wait [#allocation3], 256  }
 0x14c   :  { %165 = vsyncadd [#allocation3], 4294967040 }
 0x14d   :  { %109 = sfence }
 0x14e   :  { %110 = vsyncpa [#allocation3], 1 }
 0x14f   :  { %111 = vsyncpa [#allocation4], 1 }

</bundles_post_ra>
